<compile_context>
chip_gen: v7x
topology: tpu7x:2x2x1
jax: 0.10.0
libtpu: 0.0.40
codegen_flags: <defaults>
</compile_context>

<pallas_src>
import jax
import jax.numpy as jnp
from jax import lax
from jax.experimental import pallas as pl
from jax.experimental.pallas import tpu as pltpu

LANE = 128


def _round_up(n, m):
    return ((n + m - 1) // m) * m


def _cdiv(a, b):
    return -(-a // b)


def mlp_kernel(x_ref, w1_ref, b1_ref, w2_ref, b2_ref,
               w3_ref, b3_ref, w4_ref, b4_ref, o_ref):
    # Feature-major: batch lives on the 128-lane axis.
    x = x_ref[...]                                        # [1, TB] f32

    # Layer 1: Linear(1, 20) + ReLU.  Contraction dim K == 1 -> VPU broadcast
    # multiply (f32) instead of a degenerate MXU matmul.
    h = jnp.maximum(w1_ref[...] * x + b1_ref[...], 0.0)   # [20,1]*[1,TB] -> [20,TB]
    # Dropout(p) == identity in eval mode.

    # Layer 2: Linear(20, 20) + ReLU.  Lane-dense MXU matmul; operands pinned
    # to bf16 (single-pass bf16 MXU path), accumulation in f32.
    h = jnp.dot(w2_ref[...].astype(jnp.bfloat16), h.astype(jnp.bfloat16),
                preferred_element_type=jnp.float32) + b2_ref[...]   # [20,TB]
    h = jnp.maximum(h, 0.0)

    # Layer 3: Linear(20, 10) + LeakyReLU (default negative_slope = 0.01).
    h = jnp.dot(w3_ref[...].astype(jnp.bfloat16), h.astype(jnp.bfloat16),
                preferred_element_type=jnp.float32) + b3_ref[...]   # [10,TB]
    h = jnp.where(h > 0.0, h, 0.01 * h)

    # Layer 4: Linear(10, 1).  Output dim N == 1 -> VPU multiply + cross-sublane
    # reduce (XLU) instead of wasting an MXU pass.  All f32.
    o_ref[...] = jnp.sum(w4_ref[...] * h, axis=0, keepdims=True) + b4_ref[...]
    # TODO(synk): if a bundle dump shows the vld/vst slots bound by the [20,TB]
    #             f32 intermediates, wrap layers 1-4 in an inner lane-chunk
    #             lax.fori_loop so each chunk's 4-layer chain stays
    #             register-resident.
    # TODO(synk): MC-dropout sampling (ensemble_uncertainity_estimate) can be
    #             added with an extra "parallel" sample grid axis and in-kernel
    #             pltpu.prng_seed / pltpu.prng_random_bits dropout masks.


def _select_tiling(B, tb=None):
    """Pick (batch tile, vmem_limit_bytes), generation-aware."""
    Bp = _round_up(B, LANE)
    try:
        vmem_phys = int(getattr(pltpu.get_tpu_info(), "vmem_capacity_bytes",
                                64 << 20))
    except Exception:
        vmem_phys = 64 << 20                      # conservative (v7x-sized)

    if vmem_phys >= (100 << 20):
        # 128 MiB VMEM parts (v5e / v6e): large tiles; single TensorCore/chip.
        tb_cap, vmem_limit, min_steps = 131072, 96 << 20, 1
    else:
        # 64 MiB VMEM parts (v7x): cap peak well under physical and keep >=2
        # grid steps so the "parallel" axis feeds both TensorCores.
        tb_cap, vmem_limit, min_steps = 65536, 48 << 20, 2

    if tb is None:
        steps = _cdiv(Bp, tb_cap)
        if Bp >= min_steps * LANE:
            steps = max(steps, min_steps)
        tb = _round_up(_cdiv(Bp, steps), LANE)

    tb = max(LANE, min(_round_up(tb, LANE), tb_cap, Bp))
    return tb, vmem_limit


def gpu_model_forward(x, params, tb=None):
    """x: [B, 1] float32.  Returns [B, 1] float32 (eval-mode forward)."""
    B = x.shape[0]
    tb, vmem_limit = _select_tiling(B, tb)
    Bp = _round_up(B, LANE)

    # Free contiguous reshape [B,1] -> [1,B]; pad only to a LANE multiple.  The
    # ragged last grid block (if any) is handled by Pallas' masked writes, so we
    # never pad to a full tile nor do an extra full HBM copy of the input.
    xt = x.reshape(1, B)
    if Bp != B:
        xt = jnp.pad(xt, ((0, 0), (0, Bp - B)))

    w1, b1 = params["w1"], params["b1"]
    w2, b2 = params["w2"], params["b2"]
    w3, b3 = params["w3"], params["b3"]
    w4, b4 = params["w4"], params["b4"]

    def resident(arr):
        # Full-extent block, same block every grid step -> VMEM-resident.
        return pl.BlockSpec(arr.shape, lambda i: (0, 0))

    out = pl.pallas_call(
        mlp_kernel,
        out_shape=jax.ShapeDtypeStruct((1, Bp), jnp.float32),
        grid=(_cdiv(Bp, tb),),
        in_specs=[
            pl.BlockSpec((1, tb), lambda i: (0, i)),      # x: batch-tiled
            resident(w1), resident(b1),
            resident(w2), resident(b2),
            resident(w3), resident(b3),
            resident(w4), resident(b4),
        ],
        out_specs=pl.BlockSpec((1, tb), lambda i: (0, i)),
        compiler_params=pltpu.CompilerParams(
            dimension_semantics=("parallel",),
            vmem_limit_bytes=vmem_limit),
    )(xt, w1, b1, w2, b2, w3, b3, w4, b4)

    return out[0, :B].reshape(B, 1)


def init_params(key):
    """PyTorch nn.Linear default init: U(-1/sqrt(fan_in), 1/sqrt(fan_in)).

    Stored in kernel-friendly feature-major layouts:
      w1 [20, 1]  b1 [20, 1]
      w2 [20, 20] b2 [20, 1]
      w3 [10, 20] b3 [10, 1]
      w4 [10, 1]  b4 [1, 1]   (layer-4 weight kept as an [in, 1] column)
    """
    params = {}
    layer_dims = [(1, 20), (20, 20), (20, 10), (10, 1)]
    for i, (fan_in, fan_out) in enumerate(layer_dims, start=1):
        key, kw, kb = jax.random.split(key, 3)
        bound = 1.0 / float(fan_in) ** 0.5
        params[f"w{i}"] = jax.random.uniform(
            kw, (fan_out, fan_in), jnp.float32, -bound, bound)   # [out, in]
        params[f"b{i}"] = jax.random.uniform(
            kb, (fan_out, 1), jnp.float32, -bound, bound)        # [out, 1]
    params["w4"] = params["w4"].reshape(10, 1)                   # [1,10] -> [10,1]
    return params


def reference_forward(x, params, mxu_bf16=True):
    """Pure-JAX batch-major reference (PyTorch eval-mode forward).

    mxu_bf16=True mirrors the kernel's pinned precision: layers 2/3 use bf16
    operands with f32 accumulation; layers 1/4 and all elementwise math are f32.
    mxu_bf16=False uses full-f32 (Precision.HIGHEST) matmuls.
    """
    if mxu_bf16:
        cast = lambda a: a.astype(jnp.bfloat16)
        prec = None
    else:
        cast = lambda a: a
        prec = lax.Precision.HIGHEST
    # Layer 1 (K == 1): exact f32 broadcast multiply, as in the kernel.
    h = jnp.maximum(x * params["w1"][:, 0][None, :]
                    + params["b1"][:, 0][None, :], 0.0)
    h = jnp.dot(cast(h), cast(params["w2"].T), precision=prec,
                preferred_element_type=jnp.float32) + params["b2"][:, 0][None, :]
    h = jnp.maximum(h, 0.0)
    h = jnp.dot(cast(h), cast(params["w3"].T), precision=prec,
                preferred_element_type=jnp.float32) + params["b3"][:, 0][None, :]
    h = jnp.where(h > 0.0, h, 0.01 * h)
    # Layer 4 (N == 1): exact f32 multiply + reduce, as in the kernel.
    return jnp.sum(h * params["w4"][:, 0][None, :], axis=1,
                   keepdims=True) + params["b4"]


if __name__ == "__main__":
    key = jax.random.PRNGKey(0)
    key, kx1, kx2, kx3 = jax.random.split(key, 4)
    params = init_params(key)

    # Small single-tile case.
    B = 8
    x = jax.random.normal(kx1, (B, 1), jnp.float32)
    out = jax.block_until_ready(gpu_model_forward(x, params))
    ref = reference_forward(x, params)                      # precision-matched
    ref_f32 = reference_forward(x, params, mxu_bf16=False)  # full-f32 semantics
    assert out.shape == (B, 1)
    assert jnp.allclose(out, ref, atol=1e-4, rtol=1e-4), \
        "mismatch vs precision-matched reference (B=8)"
    assert jnp.allclose(out, ref_f32, atol=5e-2, rtol=5e-2), \
        "mismatch vs f32 reference (B=8)"

    # Multi-tile case with a ragged last block (Bp=384, tb=256) exercising the
    # masked-write / non-divisible grid path plus the pad-to-LANE path.
    B2 = 300
    x2 = jax.random.normal(kx2, (B2, 1), jnp.float32)
    out2 = jax.block_until_ready(gpu_model_forward(x2, params, tb=256))
    ref2 = reference_forward(x2, params)
    assert out2.shape == (B2, 1)
    assert jnp.allclose(out2, ref2, atol=1e-4, rtol=1e-4), \
        "mismatch vs precision-matched reference (B=300)"

    # Module-sized batch (N=100) with automatic, generation-aware tiling.
    B3 = 100
    x3 = jax.random.normal(kx3, (B3, 1), jnp.float32)
    out3 = jax.block_until_ready(gpu_model_forward(x3, params))
    ref3 = reference_forward(x3, params)
    assert out3.shape == (B3, 1)
    assert jnp.allclose(out3, ref3, atol=1e-4, rtol=1e-4), \
        "mismatch vs precision-matched reference (B=100)"

    print("KERNEL_OK")
</pallas_src>

<mosaic_0001>
module attributes {stable_mosaic.version = 11 : i64} {
  func.func @mlp_kernel(%arg0: i32, %arg1: memref<1x128xf32, #tpu.memory_space<vmem>>, %arg2: memref<20x1xf32, #tpu.memory_space<vmem>>, %arg3: memref<20x1xf32, #tpu.memory_space<vmem>>, %arg4: memref<20x20xf32, #tpu.memory_space<vmem>>, %arg5: memref<20x1xf32, #tpu.memory_space<vmem>>, %arg6: memref<10x20xf32, #tpu.memory_space<vmem>>, %arg7: memref<10x1xf32, #tpu.memory_space<vmem>>, %arg8: memref<10x1xf32, #tpu.memory_space<vmem>>, %arg9: memref<1x1xf32, #tpu.memory_space<vmem>>, %arg10: memref<1x128xf32, #tpu.memory_space<vmem>>) attributes {dimension_semantics = [#tpu.dimension_semantics<parallel>], iteration_bounds = array<i64: 1>, scalar_prefetch = 0 : i64, scratch_operands = 0 : i64, tpu.core_type = #tpu.core_type<tc>, window_params = [{transform_indices = @transform_0, window_bounds = array<i64: 1, 128>}, {pipeline_mode = #tpu.pipeline_mode<synchronous>, transform_indices = @transform_1, window_bounds = array<i64: 20, 1>}, {pipeline_mode = #tpu.pipeline_mode<synchronous>, transform_indices = @transform_2, window_bounds = array<i64: 20, 1>}, {pipeline_mode = #tpu.pipeline_mode<synchronous>, transform_indices = @transform_3, window_bounds = array<i64: 20, 20>}, {pipeline_mode = #tpu.pipeline_mode<synchronous>, transform_indices = @transform_4, window_bounds = array<i64: 20, 1>}, {pipeline_mode = #tpu.pipeline_mode<synchronous>, transform_indices = @transform_5, window_bounds = array<i64: 10, 20>}, {pipeline_mode = #tpu.pipeline_mode<synchronous>, transform_indices = @transform_6, window_bounds = array<i64: 10, 1>}, {pipeline_mode = #tpu.pipeline_mode<synchronous>, transform_indices = @transform_7, window_bounds = array<i64: 10, 1>}, {pipeline_mode = #tpu.pipeline_mode<synchronous>, transform_indices = @transform_8, window_bounds = array<i64: 1, 1>}, {transform_indices = @transform_9, window_bounds = array<i64: 1, 128>}]} {
    %c0 = arith.constant 0 : index
    %c0_0 = arith.constant 0 : index
    %0 = vector.load %arg1[%c0, %c0_0] : memref<1x128xf32, #tpu.memory_space<vmem>>, vector<1x128xf32>
    %c0_1 = arith.constant 0 : index
    %c0_2 = arith.constant 0 : index
    %1 = vector.load %arg2[%c0_1, %c0_2] : memref<20x1xf32, #tpu.memory_space<vmem>>, vector<20x1xf32>
    %2 = vector.broadcast %1 : vector<20x1xf32> to vector<20x128xf32>
    %3 = vector.broadcast %0 : vector<1x128xf32> to vector<20x128xf32>
    %4 = arith.mulf %2, %3 : vector<20x128xf32>
    %c0_3 = arith.constant 0 : index
    %c0_4 = arith.constant 0 : index
    %5 = vector.load %arg3[%c0_3, %c0_4] : memref<20x1xf32, #tpu.memory_space<vmem>>, vector<20x1xf32>
    %6 = vector.broadcast %5 : vector<20x1xf32> to vector<20x128xf32>
    %7 = arith.addf %4, %6 : vector<20x128xf32>
    %cst = arith.constant 0.000000e+00 : f32
    %8 = vector.broadcast %cst : f32 to vector<20x128xf32>
    %9 = arith.maximumf %7, %8 : vector<20x128xf32>
    %c0_5 = arith.constant 0 : index
    %c0_6 = arith.constant 0 : index
    %10 = vector.load %arg4[%c0_5, %c0_6] : memref<20x20xf32, #tpu.memory_space<vmem>>, vector<20x20xf32>
    %11 = arith.truncf %10 : vector<20x20xf32> to vector<20x20xbf16>
    %12 = arith.truncf %9 : vector<20x128xf32> to vector<20x128xbf16>
    %cst_7 = arith.constant dense<0.000000e+00> : vector<20x128xf32>
    %13 = tpu.matmul %11, %12, %cst_7 {dimension_numbers = #tpu.dot_dimension_numbers<[1], [0], [0], [1], [0, 0, 1, 1], [], []>} : vector<20x20xbf16>, vector<20x128xbf16>, vector<20x128xf32> -> vector<20x128xf32>
    %c0_8 = arith.constant 0 : index
    %c0_9 = arith.constant 0 : index
    %14 = vector.load %arg5[%c0_8, %c0_9] : memref<20x1xf32, #tpu.memory_space<vmem>>, vector<20x1xf32>
    %15 = vector.broadcast %14 : vector<20x1xf32> to vector<20x128xf32>
    %16 = arith.addf %13, %15 : vector<20x128xf32>
    %cst_10 = arith.constant 0.000000e+00 : f32
    %17 = vector.broadcast %cst_10 : f32 to vector<20x128xf32>
    %18 = arith.maximumf %16, %17 : vector<20x128xf32>
    %c0_11 = arith.constant 0 : index
    %c0_12 = arith.constant 0 : index
    %19 = vector.load %arg6[%c0_11, %c0_12] : memref<10x20xf32, #tpu.memory_space<vmem>>, vector<10x20xf32>
    %20 = arith.truncf %19 : vector<10x20xf32> to vector<10x20xbf16>
    %21 = arith.truncf %18 : vector<20x128xf32> to vector<20x128xbf16>
    %cst_13 = arith.constant dense<0.000000e+00> : vector<10x128xf32>
    %22 = tpu.matmul %20, %21, %cst_13 {dimension_numbers = #tpu.dot_dimension_numbers<[1], [0], [0], [1], [0, 0, 1, 1], [], []>} : vector<10x20xbf16>, vector<20x128xbf16>, vector<10x128xf32> -> vector<10x128xf32>
    %c0_14 = arith.constant 0 : index
    %c0_15 = arith.constant 0 : index
    %23 = vector.load %arg7[%c0_14, %c0_15] : memref<10x1xf32, #tpu.memory_space<vmem>>, vector<10x1xf32>
    %24 = vector.broadcast %23 : vector<10x1xf32> to vector<10x128xf32>
    %25 = arith.addf %22, %24 : vector<10x128xf32>
    %cst_16 = arith.constant 0.000000e+00 : f32
    %26 = vector.broadcast %cst_16 : f32 to vector<10x128xf32>
    %27 = arith.cmpf ogt, %25, %26 : vector<10x128xf32>
    %cst_17 = arith.constant 0.00999999977 : f32
    %28 = vector.broadcast %cst_17 : f32 to vector<10x128xf32>
    %29 = arith.mulf %28, %25 : vector<10x128xf32>
    %30 = arith.select %27, %25, %29 : vector<10x128xi1>, vector<10x128xf32>
    %c0_18 = arith.constant 0 : index
    %c0_19 = arith.constant 0 : index
    %31 = vector.load %arg8[%c0_18, %c0_19] : memref<10x1xf32, #tpu.memory_space<vmem>>, vector<10x1xf32>
    %32 = vector.broadcast %31 : vector<10x1xf32> to vector<10x128xf32>
    %33 = arith.mulf %32, %30 : vector<10x128xf32>
    %cst_20 = arith.constant dense<0.000000e+00> : vector<128xf32>
    %34 = vector.multi_reduction <add>, %33, %cst_20 [0] : vector<10x128xf32> to vector<128xf32>
    %35 = vector.shape_cast %34 : vector<128xf32> to vector<1x128xf32>
    %c0_21 = arith.constant 0 : index
    %c0_22 = arith.constant 0 : index
    %36 = vector.load %arg9[%c0_21, %c0_22] : memref<1x1xf32, #tpu.memory_space<vmem>>, vector<1x1xf32>
    %37 = vector.broadcast %36 : vector<1x1xf32> to vector<1x128xf32>
    %38 = arith.addf %35, %37 : vector<1x128xf32>
    %c0_23 = arith.constant 0 : index
    %c0_24 = arith.constant 0 : index
    %39 = vector.load %arg10[%c0_23, %c0_24] : memref<1x128xf32, #tpu.memory_space<vmem>>, vector<1x128xf32>
    tpu.vector_store %arg10[%c0_23, %c0_24], %38 {strides = array<i32>} : memref<1x128xf32, #tpu.memory_space<vmem>>, vector<1x128xf32>,
    return
  }
  func.func @transform_0(%arg0: i32) -> (i32, i32) {
    %c0_i32 = arith.constant 0 : i32
    %c0_i32_0 = arith.constant 0 : i32
    return %c0_i32, %arg0 : i32, i32
  }
  func.func @transform_1(%arg0: i32) -> (i32, i32) {
    %c0_i32 = arith.constant 0 : i32
    %c0_i32_0 = arith.constant 0 : i32
    %c0_i32_1 = arith.constant 0 : i32
    return %c0_i32, %c0_i32_0 : i32, i32
  }
  func.func @transform_2(%arg0: i32) -> (i32, i32) {
    %c0_i32 = arith.constant 0 : i32
    %c0_i32_0 = arith.constant 0 : i32
    %c0_i32_1 = arith.constant 0 : i32
    return %c0_i32, %c0_i32_0 : i32, i32
  }
  func.func @transform_3(%arg0: i32) -> (i32, i32) {
    %c0_i32 = arith.constant 0 : i32
    %c0_i32_0 = arith.constant 0 : i32
    %c0_i32_1 = arith.constant 0 : i32
    return %c0_i32, %c0_i32_0 : i32, i32
  }
  func.func @transform_4(%arg0: i32) -> (i32, i32) {
    %c0_i32 = arith.constant 0 : i32
    %c0_i32_0 = arith.constant 0 : i32
    %c0_i32_1 = arith.constant 0 : i32
    return %c0_i32, %c0_i32_0 : i32, i32
  }
  func.func @transform_5(%arg0: i32) -> (i32, i32) {
    %c0_i32 = arith.constant 0 : i32
    %c0_i32_0 = arith.constant 0 : i32
    %c0_i32_1 = arith.constant 0 : i32
    return %c0_i32, %c0_i32_0 : i32, i32
  }
  func.func @transform_6(%arg0: i32) -> (i32, i32) {
    %c0_i32 = arith.constant 0 : i32
    %c0_i32_0 = arith.constant 0 : i32
    %c0_i32_1 = arith.constant 0 : i32
    return %c0_i32, %c0_i32_0 : i32, i32
  }
  func.func @transform_7(%arg0: i32) -> (i32, i32) {
    %c0_i32 = arith.constant 0 : i32
    %c0_i32_0 = arith.constant 0 : i32
    %c0_i32_1 = arith.constant 0 : i32
    return %c0_i32, %c0_i32_0 : i32, i32
  }
  func.func @transform_8(%arg0: i32) -> (i32, i32) {
    %c0_i32 = arith.constant 0 : i32
    %c0_i32_0 = arith.constant 0 : i32
    %c0_i32_1 = arith.constant 0 : i32
    return %c0_i32, %c0_i32_0 : i32, i32
  }
  func.func @transform_9(%arg0: i32) -> (i32, i32) {
    %c0_i32 = arith.constant 0 : i32
    %c0_i32_0 = arith.constant 0 : i32
    return %c0_i32, %arg0 : i32, i32
  }
}

</mosaic_0001>

<bundles_post_ra>
// kernel: tpu_custom_call.1
= control target key start
LH: loop header
LB: loop body
LE: loop exit
PB: predicated region body
PF: predicated region fallthrough
CT: control target
= control target key end

     0   :  { %s484_s0 = inlined_call_operand.vmem [shape: f32[1,128], index: 0, kind: input, shape index: {}]   ;;  %s485_s1 = inlined_call_operand.vmem [shape: f32[20,1], index: 1, kind: input, shape index: {}]   ;;  %s486_s2 = inlined_call_operand.vmem [shape: f32[20,1], index: 2, kind: input, shape index: {}]   ;;  %s487_s3 = inlined_call_operand.vmem [shape: f32[20,20], index: 3, kind: input, shape index: {}]   ;;  %s488_s4 = inlined_call_operand.vmem [shape: f32[20,1], index: 4, kind: input, shape index: {}]   ;;  %s489_s5 = inlined_call_operand.vmem [shape: f32[10,20], index: 5, kind: input, shape index: {}]   ;;  %s490_s6 = inlined_call_operand.vmem [shape: f32[10,1], index: 6, kind: input, shape index: {}]   ;;  %s491_s7 = inlined_call_operand.vmem [shape: f32[10,1], index: 7, kind: input, shape index: {}]   ;;  %s492_s8 = inlined_call_operand.<no memory space> [shape: f32[1,1], index: 8, kind: input, shape index: {}]   ;;  %s493_s9 = inlined_call_operand.hbm [shape: f32[1,128], index: 9, kind: output, shape index: {}]  }
   0x1   :  { %v14_v0 = vstv %s492_s8 }
   0x2   :  { %15 = vst [vmem:[#allocation2] sm:$0x1] %v14_v0 }
   0x3   :  { %v64_v1 = vld [vmem:[%s486_s2] sm:$0xff]  ;;  %v351_v3 = vmov 0   ;;  %v65_v4 = vld [vmem:[%s486_s2 + $0x8] sm:$0xff] }
   0x4   :  { %v37_v2 = vld [vmem:[%s485_s1] sm:$0xff]  ;;  %326 = vset.pattern.permute.xlu1 %v351_v3  ;;  %325 = vset.pattern.permute.xlu0 %v351_v3  ;;  %v38_v5 = vld [vmem:[%s485_s1 + $0x8] sm:$0xff] }
   0x5   :  { %69 = vperm.xlu1 %326, %v64_v1   ;;  %42 = vperm.xlu0 %325, %v37_v2  }
   0x6   :  { %16 = vsyncpa [#allocation4], 0  ;;  %v66_v6 = vld [vmem:[%s486_s2 + $0x10] sm:$0xf]  ;;  %v96_v8 = vld [vmem:[%s488_s4 + $0x8] sm:$0xff]  ;;  %vm113_vm0 = vcmask 162816  }
   0x7   :  { %v39_v7 = vld [vmem:[%s485_s1 + $0x10] sm:$0xf]  ;;  %v95_v9 = vld [vmem:[%s488_s4] sm:$0xff]  ;;  %v181_v10 = vld [vmem:[%s490_s6 + $0x8] sm:$0x3]  ;;  %vm120_vm1 = vcmask 1041408  }
   0x8   :  { %v97_v11 = vld [vmem:[%s488_s4 + $0x10] sm:$0xf]  ;;  %v88_v12 = vld [vmem:[%s487_s3] sm:$0xff]  ;;  %v89_v13 = vld [vmem:[%s487_s3 + $0x8] sm:$0xff]  ;;  %v352_v40 = vmov 0.0   ;;  %vm353_vm2 = vmmov 0  }
   0x9   :  { %74 = vperm.xlu1 %326, %v65_v4   ;;  %47 = vperm.xlu0 %325, %v38_v5   ;;  %v246_v14 = vld [vmem:[%s491_s7 + $0x8] sm:$0x3]  ;;  %v180_v15 = vld [vmem:[%s490_s6] sm:$0xff]  ;;  %v91_v16 = vpack.c.bf16 %v89_v13, %v88_v12  ;;  %v90_v36 = vld [vmem:[%s487_s3 + $0x10] sm:$0xf]  ;;  %v273_v13 = vlaneseq }
   0xa   :  { %v267_v17 = vld [vmem:[#allocation2] sm:$0x1]  ;;  %v92_v39 = vpack.c.bf16 %v90_v36, %v90_v36  ;;  %312 = vmatprep.subr.bf16.mxu1 %v352_v40  ;;  %316 = vmatprep.mubr.msk.bf16.mxu1 %vm353_vm2, %v352_v40  ;;  %v176_v57 = vld [vmem:[%s489_s5 + $0x8] sm:$0x3] }
   0xb   :  { %308 = vmatprep.mubr.msk.bf16.mxu0 %vm113_vm0, %v91_v16  ;;  %v245_v18 = vld [vmem:[%s491_s7] sm:$0xff]  ;;  %v274_v16 = vshrl.u32 %v273_v13, 7 }
   0xc   :  { %v293_v19 = vld [vmem:[%s484_s0] ss:$0 sm:$0xff] }
   0xd   :  { %79 = vperm.xlu1 %326, %v66_v6   ;;  %52 = vperm.xlu0 %325, %v39_v7   ;;  %v175_v56 = vld [vmem:[%s489_s5] sm:$0xff]  ;;  %s354_s5 = smov [#allocation3]  }
   0xe   :  { %v177_v59 = vpack.c.bf16 %v176_v57, %v175_v56  ;;  %s285_s19 = sshll.u32 %s354_s5, 4  ;;  %s286_s19 = int_to_ptr.vmem [resolvable:$true] %s285_s19 }
   0xf   :  { %s327_s20 = scalar_lea.vmem %s286_s19, 16  ;;  %s331_s21 = scalar_lea.vmem %s286_s19, 32 }
  0x10   :  { %p328_p0 = scmp.ne.s32.totalorder %s286_s19, %s327_s20  ;;  %p332_p1 = scmp.lt.s32.totalorder %s286_s19, %s286_s19 }
  0x11   :  { %105 = vperm.xlu1 %326, %v96_v8   ;;  %100 = vperm.xlu0 %325, %v95_v9   ;;  %p333_p2 = scmp.lt.s32.totalorder %s331_s21, %s327_s20 }
  0x13   :  { %p334_p3 = por %p333_p2, %p332_p1 }
  0x15   :  { %189 = vperm.xlu1 %326, %v181_v10   ;;  %110 = vperm.xlu0 %325, %v97_v11   ;;  %p335_p4 = pnand %p334_p3, %p328_p0 }
  0x19   :  { %254 = vperm.xlu1 %326, %v246_v14   ;;  %184 = vperm.xlu0 %325, %v180_v15  }
  0x1d   :  { %270 = vperm.xlu1 %326, %v267_v17   ;;  %249 = vperm.xlu0 %325, %v245_v18  }
  0x84   :  { %v70_v20 = vpop.permute.xlu1 %69  ;;  %v43_v21 = vpop.permute.xlu0 %42 }
  0x85   :  { %v61_v22 = vmul.f32 %v293_v19, %v43_v21 }
  0x87   :  { %v82_v25 = vadd.f32 %v70_v20, %v61_v22 }
  0x88   :  { %v75_v23 = vpop.permute.xlu1 %74  ;;  %v48_v24 = vpop.permute.xlu0 %47 }
  0x89   :  { %v62_v26 = vmul.f32 %v293_v19, %v48_v24  ;;  %v85_v29 = vmax.f32 %v82_v25, 0.0 }
  0x8b   :  { %v83_v27 = vadd.f32 %v75_v23, %v62_v26 }
  0x8c   :  { %v53_v28 = vpop.permute.xlu0 %52  ;;  %v80_v32 = vpop.permute.xlu1 %79 }
  0x8d   :  { %v86_v30 = vmax.f32 %v83_v27, 0.0  ;;  %v63_v31 = vmul.f32 %v293_v19, %v53_v28  ;;  %v275_v19 = vsub.s32 0, %v274_v16 }
  0x8f   :  { %v84_v33 = vadd.f32 %v80_v32, %v63_v31  ;;  %v93_v34 = vpack.c.bf16 %v86_v30, %v85_v29 }
  0x90   :  { %v101_v41 = vpop.permute.xlu0 %100  ;;  %v106_v48 = vpop.permute.xlu1 %105 }
  0x91   :  { %v87_v35 = vmax.f32 %v84_v33, 0.0  ;;  %304 = vmatprep.subr.bf16.mxu0 %v93_v34 }
  0x92   :  { %305 = vmatpush3.bf16.msra.mxu0 %v93_v34 }
  0x93   :  { %v94_v37 = vpack.c.bf16 %v87_v35, %v87_v35 }
  0x94   :  { %v111_v42 = vpop.permute.xlu0 %110  ;;  %v190_v62 = vpop.permute.xlu1 %189 }
  0x95   :  { %320 = vmatprep.subr.msk.bf16.mxu0 %vm120_vm1, %v94_v37  ;;  %v122_v38 = vsel %vm120_vm1, %v94_v37, 0 }
  0x96   :  { %307 = vmatpush3.bf16.msra.mxu0 %v122_v38 }
  0x98   :  { %v185_v60 = vpop.permute.xlu0 %184  ;;  %v255_v7 = vpop.permute.xlu1 %254 }
  0x99   :  { %309 = vmatmul.mubr.msk.bf16.vlgmr.msra.gmra.mrb[0].mxu0 %vm113_vm0, %v92_v39 }
  0x9c   :  { %v250_v9 = vpop.permute.xlu0 %249  ;;  %v271_v21 = vpop.permute.xlu1 %270 }
  0x9d   :  { %v276_v23 = vrot.slane %v271_v21, %v275_v19 }
 0x16c   :  { %v310_v43 = vpop.f32.mrb[0].mxu0 }
 0x16d   :  { %v167_v44 = vadd.f32 %v310_v43, %v111_v42  ;;  %v158_v45 = vpop.f32.mrb[1].mxu0 }
 0x16e   :  { %v159_v46 = vadd.f32 %v158_v45, %v101_v41  ;;  %v311_v47 = vpop.f32.mrb[2].mxu0 }
 0x16f   :  { %v161_v49 = vpop.f32.mrb[3].mxu0  ;;  %v174_v51 = vmax.f32 %v167_v44, 0.0 }
 0x170   :  { %v162_v50 = vadd.f32 %v161_v49, %v106_v48  ;;  %v172_v52 = vmax.f32 %v159_v46, 0.0 }
 0x171   :  { %v179_v55 = vpack.c.bf16 %v174_v51, %v174_v51 }
 0x172   :  { %v173_v53 = vmax.f32 %v162_v50, 0.0 }
 0x173   :  { %v196_v58 = vsel %vm120_vm1, %v179_v55, 0 }
 0x174   :  { %v178_v54 = vpack.c.bf16 %v173_v53, %v172_v52 }
 0x176   :  { %313 = vmatpush3.bf16.msra.mxu1 %v178_v54 }
 0x177   :  { %314 = vmatprep.subr.bf16.mxu1 %v352_v40 }
 0x17a   :  { %315 = vmatpush3.bf16.msra.mxu1 %v196_v58 }
 0x17d   :  { %317 = vmatmul.mubr.msk.bf16.vlgmr.msra.gmra.mrb[0].mxu1 %vm113_vm0, %v177_v59 }
 0x250   :  { %v232_v61 = vpop.f32.mrb[0].mxu1 }
 0x251   :  { %v233_v63 = vadd.f32 %v232_v61, %v185_v60  ;;  %v318_v0 = vpop.f32.mrb[1].mxu1 }
 0x252   :  { %v235_v1 = vpop.f32.mrb[2].mxu1 }
 0x253   :  { %vm239_vm3 = vcmp.gt.f32.partialorder %v233_v63, 0.0  ;;  %v241_v2 = vmul.f32 0.01, %v233_v63  ;;  %v236_v3 = vadd.f32 %v235_v1, %v190_v62  ;;  %v319_v4 = vpop.f32.mrb[3].mxu1 }
 0x255   :  { %vm240_vm4 = vcmp.gt.f32.partialorder %v236_v3, 0.0  ;;  %v242_v5 = vmul.f32 0.01, %v236_v3  ;;  %v243_v6 = vsel %vm239_vm3, %v233_v63, %v241_v2 }
 0x256   :  { %v257_v11 = vmul.f32 %v250_v9, %v243_v6 }
 0x257   :  { %v244_v8 = vsel %vm240_vm4, %v236_v3, %v242_v5 }
 0x258   :  { %v258_v10 = vmul.f32 %v255_v7, %v244_v8 }
 0x25a   :  { %v259_v12 = vsel %vm120_vm1, %v258_v10, 0.0 }
 0x25b   :  { %v260_v14 = vadd.f32 %v259_v12, %v257_v11 }
 0x25d   :  { %v261_v15 = vrot.slane %v260_v14, 4 }
 0x25f   :  { %v262_v17 = vadd.f32 %v261_v15, %v260_v14 }
 0x261   :  { %v263_v18 = vrot.slane %v262_v17, 2 }
 0x263   :  { %v264_v20 = vadd.f32 %v263_v18, %v262_v17 }
 0x265   :  { %v265_v22 = vrot.slane %v264_v20, 1 }
 0x267   :  { %v266_v24 = vadd.f32 %v265_v22, %v264_v20 }
 0x269   :  { %v277_v25 = vadd.f32 %v276_v23, %v266_v24 }
 0x26b   :  { %278 = vst [vmem:[#allocation3] sm:$0x1] %v277_v25 }
 0x26c   :  { %338 = shalt.err (!%p335_p4)
}
 0x26d   :  { %s339_s24 = scalar_lea.hbm %s493_s9, 16 }
 0x26e   :  { %p340_p5 = scmp.ne.s32.totalorder %s493_s9, %s339_s24  ;;  %p343_p6 = scmp.lt.u32.totalorder %s339_s24, %s493_s9 }
 0x270   :  { %p345_p7 = pnand %p343_p6, %p340_p5 }
 0x272   :  { %348 = shalt.err (!%p345_p7)
}
 0x273   :  { %288 = dma.vmem_to_hbm [thread:$0]  %s286_s19, 16, %s493_s9, [#allocation4]  }
 0x274   :  { %349 = dma.done.wait [#allocation4], 16  }
 0x275   :  { %350 = vsyncadd [#allocation4], 4294967280 }
 0x276   :  { %292 = vsyncpa [#allocation4], 1 }

</bundles_post_ra>
